<compile_context>
chip_gen: v6e
topology: v6e:2x2x1
jax: 0.10.0
libtpu: 0.0.40
codegen_flags: <defaults>
</compile_context>

<pallas_src>
import functools

import jax
import jax.numpy as jnp
from jax.experimental import pallas as pl
from jax.experimental.pallas import tpu as pltpu


def _round_up(v, m):
    return ((v + m - 1) // m) * m


def vae_fused_kernel(
    x_ref,      # (TM, D_in)      bf16   batch tile
    we_ref,     # (D_in, H_pad)   bf16   encoder weight (H zero-padded)
    be_ref,     # (1, H_pad)      f32    encoder bias   (zero-padded)
    wml_ref,    # (H_pad, 2Z)     bf16   fused [mu | logvar] weight
    bml_ref,    # (1, 2Z)         f32    fused [mu | logvar] bias
    wd_ref,     # (Z, D_in)       bf16   decoder weight
    bd_ref,     # (1, D_in)       f32    decoder bias
    eps_ref,    # (TM, Z)         f32    reparameterization noise tile
    out_ref,    # (TM, D_in+2Z)   f32    packed [recon | mu | logvar]
):
    z_dim = eps_ref.shape[-1]

    # encoder: hidden = x @ We + be  (bf16 MXU operands, f32 accumulation)
    hidden = jnp.dot(x_ref[...], we_ref[...],
                     preferred_element_type=jnp.float32) + be_ref[...]

    # fused mu/logvar: one (TM, 2Z) MXU pass instead of two 32-lane ones
    ml = jnp.dot(hidden.astype(wml_ref.dtype), wml_ref[...],
                 preferred_element_type=jnp.float32) + bml_ref[...]
    mu = ml[:, :z_dim]
    logvar = ml[:, z_dim:]

    # reparameterize in f32 (exp goes to the EUP)
    std = jnp.exp(0.5 * logvar)
    z = mu + eps_ref[...] * std

    # decoder: recon = z @ Wd + bd
    recon = jnp.dot(z.astype(wd_ref.dtype), wd_ref[...],
                    preferred_element_type=jnp.float32) + bd_ref[...]

    # single lane-dense store: [recon | mu | logvar] (ml is already mu|logvar)
    out_ref[...] = jnp.concatenate([recon, ml], axis=-1).astype(out_ref.dtype)


def vae_forward(x, params, eps, *, tm=None, mxu_dtype=jnp.bfloat16):
    """Runs the fused VAE forward kernel. Returns (recon, mu, logvar)."""
    b, d_in = x.shape
    h = params["we"].shape[1]
    z = params["wmu"].shape[1]
    d_out = d_in + 2 * z          # 64 + 2*32 = 128 -> lane-dense output slab
    h_pad = _round_up(h, 128)     # 100 -> 128

    # ---- weight fusion + H padding (cheap, done in the wrapper) ----
    we = jnp.pad(params["we"], ((0, 0), (0, h_pad - h))).astype(mxu_dtype)
    be = jnp.pad(params["be"], ((0, 0), (0, h_pad - h)))                     # f32
    wml = jnp.concatenate([params["wmu"], params["wlv"]], axis=1)            # (H, 2Z)
    wml = jnp.pad(wml, ((0, h_pad - h), (0, 0))).astype(mxu_dtype)           # (H_pad, 2Z)
    bml = jnp.concatenate([params["bmu"], params["blv"]], axis=1)            # (1, 2Z) f32
    wd = params["wd"].astype(mxu_dtype)
    bd = params["bd"]

    # ---- batch tiling: pad B to a multiple of the tile ----
    if tm is None:
        tm = b if b <= 512 else 512   # safe for 64 MiB VMEM on v7x, ample on v5e/v6e
    b_pad = _round_up(b, tm)
    x_p = jnp.pad(x, ((0, b_pad - b), (0, 0))).astype(mxu_dtype)
    eps_p = jnp.pad(eps, ((0, b_pad - b), (0, 0)))

    const = lambda i: (0, 0)   # weights: same block every grid step (VMEM-resident)
    tile = lambda i: (i, 0)    # x / eps / output: tiled along the batch

    packed = pl.pallas_call(
        vae_fused_kernel,
        out_shape=jax.ShapeDtypeStruct((b_pad, d_out), jnp.float32),
        grid_spec=pltpu.PrefetchScalarGridSpec(
            num_scalar_prefetch=0,
            grid=(b_pad // tm,),
            in_specs=[
                pl.BlockSpec((tm, d_in), tile),       # x
                pl.BlockSpec((d_in, h_pad), const),   # encoder W
                pl.BlockSpec((1, h_pad), const),      # encoder b
                pl.BlockSpec((h_pad, 2 * z), const),  # fused mu|logvar W
                pl.BlockSpec((1, 2 * z), const),      # fused mu|logvar b
                pl.BlockSpec((z, d_in), const),       # decoder W
                pl.BlockSpec((1, d_in), const),       # decoder b
                pl.BlockSpec((tm, z), tile),          # eps
            ],
            out_specs=pl.BlockSpec((tm, d_out), tile),
        ),
        compiler_params=pltpu.CompilerParams(
            dimension_semantics=("parallel",),
        ),
    )(x_p, we, be, wml, bml, wd, bd, eps_p)

    recon = packed[:b, :d_in]
    mu = packed[:b, d_in:d_in + z]
    logvar = packed[:b, d_in + z:]
    return recon, mu, logvar


def init_params(key, d_in, hidden_vector_len, z_vector_len):
    ks = jax.random.split(key, 8)

    def lin(kw, kb, fan_in, fan_out):
        # PyTorch-style uniform init, bound = 1/sqrt(fan_in)
        bound = 1.0 / jnp.sqrt(fan_in)
        w = jax.random.uniform(kw, (fan_in, fan_out), jnp.float32, -bound, bound)
        b = jax.random.uniform(kb, (1, fan_out), jnp.float32, -bound, bound)
        return w, b

    we, be = lin(ks[0], ks[1], d_in, hidden_vector_len)
    wmu, bmu = lin(ks[2], ks[3], hidden_vector_len, z_vector_len)
    wlv, blv = lin(ks[4], ks[5], hidden_vector_len, z_vector_len)
    wd, bd = lin(ks[6], ks[7], z_vector_len, d_in)
    return {"we": we, "be": be, "wmu": wmu, "bmu": bmu,
            "wlv": wlv, "blv": blv, "wd": wd, "bd": bd}


def vae_forward_ref(x, params, eps, mxu_dtype=jnp.bfloat16):
    """Pure-JAX reference with the same bf16-operand / f32-accumulate matmuls."""
    f32 = jnp.float32
    xm = x.astype(mxu_dtype)
    hidden = jnp.dot(xm, params["we"].astype(mxu_dtype),
                     preferred_element_type=f32) + params["be"]
    hm = hidden.astype(mxu_dtype)
    mu = jnp.dot(hm, params["wmu"].astype(mxu_dtype),
                 preferred_element_type=f32) + params["bmu"]
    logvar = jnp.dot(hm, params["wlv"].astype(mxu_dtype),
                     preferred_element_type=f32) + params["blv"]
    z = mu + eps * jnp.exp(0.5 * logvar)
    recon = jnp.dot(z.astype(mxu_dtype), params["wd"].astype(mxu_dtype),
                    preferred_element_type=f32) + params["bd"]
    return recon, mu, logvar


if __name__ == "__main__":
    B, D_IN = 8, 64
    HIDDEN, Z = 100, 32

    key = jax.random.PRNGKey(0)
    k_x, k_p, k_eps = jax.random.split(key, 3)

    x = jax.random.normal(k_x, (B, D_IN), jnp.float32)
    params = init_params(k_p, D_IN, HIDDEN, Z)
    # eps ~ randn_like(std): generated host-side for determinism.
    # TODO(synk): could be generated in-kernel via pltpu.prng_seed/prng_random_bits
    # if bitwise parity with an external randn stream is not required.
    eps = jax.random.normal(k_eps, (B, Z), jnp.float32)

    fwd = jax.jit(vae_forward)
    recon, mu, logvar = jax.block_until_ready(fwd(x, params, eps))

    recon_r, mu_r, logvar_r = vae_forward_ref(x, params, eps)
    assert recon.shape == (B, D_IN) and mu.shape == (B, Z) and logvar.shape == (B, Z)
    assert jnp.allclose(mu, mu_r, atol=1e-3, rtol=1e-3)
    assert jnp.allclose(logvar, logvar_r, atol=1e-3, rtol=1e-3)
    assert jnp.allclose(recon, recon_r, atol=1e-3, rtol=1e-3)

    print("KERNEL_OK")
</pallas_src>

<mosaic_0001>
module attributes {stable_mosaic.version = 11 : i64} {
  func.func @vae_fused_kernel(%arg0: i32, %arg1: memref<8x64xbf16, #tpu.memory_space<vmem>>, %arg2: memref<64x128xbf16, #tpu.memory_space<vmem>>, %arg3: memref<1x128xf32, #tpu.memory_space<vmem>>, %arg4: memref<128x64xbf16, #tpu.memory_space<vmem>>, %arg5: memref<1x64xf32, #tpu.memory_space<vmem>>, %arg6: memref<32x64xbf16, #tpu.memory_space<vmem>>, %arg7: memref<1x64xf32, #tpu.memory_space<vmem>>, %arg8: memref<8x32xf32, #tpu.memory_space<vmem>>, %arg9: memref<8x128xf32, #tpu.memory_space<vmem>>) attributes {dimension_semantics = [#tpu.dimension_semantics<parallel>], iteration_bounds = array<i64: 1>, scalar_prefetch = 0 : i64, scratch_operands = 0 : i64, tpu.core_type = #tpu.core_type<tc>, window_params = [{transform_indices = @transform_0, window_bounds = array<i64: 8, 64>}, {pipeline_mode = #tpu.pipeline_mode<synchronous>, transform_indices = @transform_1, window_bounds = array<i64: 64, 128>}, {pipeline_mode = #tpu.pipeline_mode<synchronous>, transform_indices = @transform_2, window_bounds = array<i64: 1, 128>}, {pipeline_mode = #tpu.pipeline_mode<synchronous>, transform_indices = @transform_3, window_bounds = array<i64: 128, 64>}, {pipeline_mode = #tpu.pipeline_mode<synchronous>, transform_indices = @transform_4, window_bounds = array<i64: 1, 64>}, {pipeline_mode = #tpu.pipeline_mode<synchronous>, transform_indices = @transform_5, window_bounds = array<i64: 32, 64>}, {pipeline_mode = #tpu.pipeline_mode<synchronous>, transform_indices = @transform_6, window_bounds = array<i64: 1, 64>}, {transform_indices = @transform_7, window_bounds = array<i64: 8, 32>}, {transform_indices = @transform_8, window_bounds = array<i64: 8, 128>}]} {
    %c0 = arith.constant 0 : index
    %c0_0 = arith.constant 0 : index
    %0 = vector.load %arg1[%c0, %c0_0] : memref<8x64xbf16, #tpu.memory_space<vmem>>, vector<8x64xbf16>
    %c0_1 = arith.constant 0 : index
    %c0_2 = arith.constant 0 : index
    %1 = vector.load %arg2[%c0_1, %c0_2] : memref<64x128xbf16, #tpu.memory_space<vmem>>, vector<64x128xbf16>
    %cst = arith.constant dense<0.000000e+00> : vector<8x128xf32>
    %2 = tpu.matmul %0, %1, %cst {dimension_numbers = #tpu.dot_dimension_numbers<[1], [0], [0], [1], [0, 0, 1, 1], [], []>} : vector<8x64xbf16>, vector<64x128xbf16>, vector<8x128xf32> -> vector<8x128xf32>
    %c0_3 = arith.constant 0 : index
    %c0_4 = arith.constant 0 : index
    %3 = vector.load %arg3[%c0_3, %c0_4] : memref<1x128xf32, #tpu.memory_space<vmem>>, vector<1x128xf32>
    %4 = vector.broadcast %3 : vector<1x128xf32> to vector<8x128xf32>
    %5 = arith.addf %2, %4 : vector<8x128xf32>
    %6 = arith.truncf %5 : vector<8x128xf32> to vector<8x128xbf16>
    %c0_5 = arith.constant 0 : index
    %c0_6 = arith.constant 0 : index
    %7 = vector.load %arg4[%c0_5, %c0_6] : memref<128x64xbf16, #tpu.memory_space<vmem>>, vector<128x64xbf16>
    %cst_7 = arith.constant dense<0.000000e+00> : vector<8x64xf32>
    %8 = tpu.matmul %6, %7, %cst_7 {dimension_numbers = #tpu.dot_dimension_numbers<[1], [0], [0], [1], [0, 0, 1, 1], [], []>} : vector<8x128xbf16>, vector<128x64xbf16>, vector<8x64xf32> -> vector<8x64xf32>
    %c0_8 = arith.constant 0 : index
    %c0_9 = arith.constant 0 : index
    %9 = vector.load %arg5[%c0_8, %c0_9] : memref<1x64xf32, #tpu.memory_space<vmem>>, vector<1x64xf32>
    %10 = vector.broadcast %9 : vector<1x64xf32> to vector<8x64xf32>
    %11 = arith.addf %8, %10 : vector<8x64xf32>
    %12 = vector.extract_strided_slice %11 {offsets = [0, 0], sizes = [8, 32], strides = [1, 1]} : vector<8x64xf32> to vector<8x32xf32>
    %13 = vector.extract_strided_slice %11 {offsets = [0, 32], sizes = [8, 32], strides = [1, 1]} : vector<8x64xf32> to vector<8x32xf32>
    %cst_10 = arith.constant 5.000000e-01 : f32
    %14 = vector.broadcast %cst_10 : f32 to vector<8x32xf32>
    %15 = arith.mulf %14, %13 : vector<8x32xf32>
    %16 = math.exp %15 : vector<8x32xf32>
    %c0_11 = arith.constant 0 : index
    %c0_12 = arith.constant 0 : index
    %17 = vector.load %arg8[%c0_11, %c0_12] : memref<8x32xf32, #tpu.memory_space<vmem>>, vector<8x32xf32>
    %18 = arith.mulf %17, %16 : vector<8x32xf32>
    %19 = arith.addf %12, %18 : vector<8x32xf32>
    %20 = arith.truncf %19 : vector<8x32xf32> to vector<8x32xbf16>
    %c0_13 = arith.constant 0 : index
    %c0_14 = arith.constant 0 : index
    %21 = vector.load %arg6[%c0_13, %c0_14] : memref<32x64xbf16, #tpu.memory_space<vmem>>, vector<32x64xbf16>
    %cst_15 = arith.constant dense<0.000000e+00> : vector<8x64xf32>
    %22 = tpu.matmul %20, %21, %cst_15 {dimension_numbers = #tpu.dot_dimension_numbers<[1], [0], [0], [1], [0, 0, 1, 1], [], []>} : vector<8x32xbf16>, vector<32x64xbf16>, vector<8x64xf32> -> vector<8x64xf32>
    %c0_16 = arith.constant 0 : index
    %c0_17 = arith.constant 0 : index
    %23 = vector.load %arg7[%c0_16, %c0_17] : memref<1x64xf32, #tpu.memory_space<vmem>>, vector<1x64xf32>
    %24 = vector.broadcast %23 : vector<1x64xf32> to vector<8x64xf32>
    %25 = arith.addf %22, %24 : vector<8x64xf32>
    %26 = tpu.concatenate %25, %11 in 1 : vector<8x64xf32>, vector<8x64xf32> -> vector<8x128xf32>
    %c0_18 = arith.constant 0 : index
    %c0_19 = arith.constant 0 : index
    %27 = vector.load %arg9[%c0_18, %c0_19] : memref<8x128xf32, #tpu.memory_space<vmem>>, vector<8x128xf32>
    tpu.vector_store %arg9[%c0_18, %c0_19], %26 {strides = array<i32>} : memref<8x128xf32, #tpu.memory_space<vmem>>, vector<8x128xf32>,
    return
  }
  func.func @transform_0(%arg0: i32) -> (i32, i32) {
    %c0_i32 = arith.constant 0 : i32
    %c0_i32_0 = arith.constant 0 : i32
    return %arg0, %c0_i32 : i32, i32
  }
  func.func @transform_1(%arg0: i32) -> (i32, i32) {
    %c0_i32 = arith.constant 0 : i32
    %c0_i32_0 = arith.constant 0 : i32
    %c0_i32_1 = arith.constant 0 : i32
    return %c0_i32, %c0_i32_0 : i32, i32
  }
  func.func @transform_2(%arg0: i32) -> (i32, i32) {
    %c0_i32 = arith.constant 0 : i32
    %c0_i32_0 = arith.constant 0 : i32
    %c0_i32_1 = arith.constant 0 : i32
    return %c0_i32, %c0_i32_0 : i32, i32
  }
  func.func @transform_3(%arg0: i32) -> (i32, i32) {
    %c0_i32 = arith.constant 0 : i32
    %c0_i32_0 = arith.constant 0 : i32
    %c0_i32_1 = arith.constant 0 : i32
    return %c0_i32, %c0_i32_0 : i32, i32
  }
  func.func @transform_4(%arg0: i32) -> (i32, i32) {
    %c0_i32 = arith.constant 0 : i32
    %c0_i32_0 = arith.constant 0 : i32
    %c0_i32_1 = arith.constant 0 : i32
    return %c0_i32, %c0_i32_0 : i32, i32
  }
  func.func @transform_5(%arg0: i32) -> (i32, i32) {
    %c0_i32 = arith.constant 0 : i32
    %c0_i32_0 = arith.constant 0 : i32
    %c0_i32_1 = arith.constant 0 : i32
    return %c0_i32, %c0_i32_0 : i32, i32
  }
  func.func @transform_6(%arg0: i32) -> (i32, i32) {
    %c0_i32 = arith.constant 0 : i32
    %c0_i32_0 = arith.constant 0 : i32
    %c0_i32_1 = arith.constant 0 : i32
    return %c0_i32, %c0_i32_0 : i32, i32
  }
  func.func @transform_7(%arg0: i32) -> (i32, i32) {
    %c0_i32 = arith.constant 0 : i32
    %c0_i32_0 = arith.constant 0 : i32
    return %arg0, %c0_i32 : i32, i32
  }
  func.func @transform_8(%arg0: i32) -> (i32, i32) {
    %c0_i32 = arith.constant 0 : i32
    %c0_i32_0 = arith.constant 0 : i32
    return %arg0, %c0_i32 : i32, i32
  }
}

</mosaic_0001>

<bundles_post_ra>
// kernel: vae_forward.1
= control target key start
LH: loop header
LB: loop body
LE: loop exit
PB: predicated region body
PF: predicated region fallthrough
CT: control target
= control target key end

     0   :  { %v410_v0 = vmov 0.0   ;;  %vm411_vm0 = vmmov 0   ;;  %vm70_vm1 = vcmask 523264   ;;  %s412_s13 = smov 96   ;;  %s413_s14 = smov 64   ;;  %vm260_vm2 = vcmask 261120   ;;  %s524_s1 = inlined_call_operand.vmem [shape: bf16[64,128], index: 1, kind: input, shape index: {}]   ;;  %s525_s3 = inlined_call_operand.vmem [shape: bf16[128,64], index: 3, kind: input, shape index: {}]   ;;  %s526_s0 = inlined_call_operand.vmem [shape: bf16[8,64], index: 0, kind: input, shape index: {}]   ;;  %s527_s2 = inlined_call_operand.vmem [shape: f32[1,128], index: 2, kind: input, shape index: {}]   ;;  %s528_s5 = inlined_call_operand.vmem [shape: bf16[32,64], index: 5, kind: input, shape index: {}]   ;;  %s529_s4 = inlined_call_operand.vmem [shape: f32[1,64], index: 4, kind: input, shape index: {}]   ;;  %s530_s7 = inlined_call_operand.vmem [shape: f32[8,32], index: 7, kind: input, shape index: {}]   ;;  %s531_s6 = inlined_call_operand.vmem [shape: f32[1,64], index: 6, kind: input, shape index: {}]   ;;  %s532_s8 = inlined_call_operand.vmem [shape: f32[8,128], index: 8, kind: output, shape index: {}]  }
   0x1   :  { %350 = vmatprep.subr.bf16.mxu0 %v410_v0  ;;  %v394_v1 = vld [vmem:[%s524_s1 + $0x18] sm:$0xff]   ;;  %358 = vmatprep.mubr.msk.bf16.mxu0 %vm411_vm0, %v410_v0  ;;  %v395_v2 = vld [vmem:[%s524_s1 + $0x10] sm:$0xff]   ;;  %v396_v4 = vld [vmem:[%s524_s1 + $0x8] sm:$0xff]  }
   0x2   :  { %362 = vmatprep.subr.bf16.mxu1 %v410_v0  ;;  %378 = vmatprep.mubr.msk.bf16.mxu1 %vm411_vm0, %v410_v0  ;;  %v398_v3 = vld [vmem:[%s525_s3 + $0x38] sm:$0xff]   ;;  %v399_v5 = vld [vmem:[%s525_s3 + $0x30] sm:$0xff]   ;;  %v397_v6 = vld [vmem:[%s524_s1] sm:$0xff]  }
   0x3   :  { %351 = vmatpush3.bf16.msra.mxu0 %v394_v1  ;;  %363 = vmatpush3.bf16.msra.mxu1 %v398_v3  ;;  %v400_v7 = vld [vmem:[%s525_s3 + $0x28] sm:$0xff]   ;;  %v30_v8 = vld [vmem:[%s526_s0] sm:$0xf]  ;;  %v402_v10 = vld [vmem:[%s525_s3 + $0x18] sm:$0xff]  }
   0x4   :  { %352 = vmatprep.subr.bf16.mxu0 %v410_v0  ;;  %364 = vmatprep.subr.bf16.mxu1 %v410_v0  ;;  %v401_v9 = vld [vmem:[%s525_s3 + $0x20] sm:$0xff]   ;;  %v403_v11 = vld [vmem:[%s525_s3 + $0x10] sm:$0xff]   ;;  %v404_v12 = vld [vmem:[%s525_s3 + $0x8] sm:$0xff]  }
   0x5   :  { %v405_v13 = vld [vmem:[%s525_s3] sm:$0xff]   ;;  %v406_v21 = vld [vmem:[%s528_s5 + $0x8] sm:$0xff]  }
   0x6   :  { %v314_v14 = vld [vmem:[%s527_s2] ss:$0 sm:$0xff] }
   0x7   :  { %353 = vmatpush3.bf16.msra.mxu0 %v395_v2  ;;  %365 = vmatpush3.bf16.msra.mxu1 %v399_v5  ;;  %v320_v22 = vld [vmem:[%s529_s4] ss:$0 sm:$0xff] }
   0x8   :  { %354 = vmatprep.subr.bf16.mxu0 %v410_v0  ;;  %366 = vmatprep.subr.bf16.mxu1 %v410_v0  ;;  %v407_v30 = vld [vmem:[%s528_s5] sm:$0xff]  }
   0x9   :  { %v229_v32 = vld [vmem:[%s530_s7] sm:$0xff] }
   0xa   :  { %v329_v37 = vld [vmem:[%s531_s6] ss:$0 sm:$0xff] }
   0xb   :  { %355 = vmatpush3.bf16.msra.mxu0 %v396_v4  ;;  %367 = vmatpush3.bf16.msra.mxu1 %v400_v7 }
   0xc   :  { %356 = vmatprep.subr.bf16.mxu0 %v410_v0  ;;  %368 = vmatprep.subr.bf16.mxu1 %v410_v0 }
   0xf   :  { %357 = vmatpush3.bf16.msra.mxu0 %v397_v6  ;;  %369 = vmatpush3.bf16.msra.mxu1 %v401_v9 }
  0x10   :  { %382 = vmatprep.subr.bf16.mxu0 %v410_v0  ;;  %370 = vmatprep.subr.bf16.mxu1 %v410_v0 }
  0x12   :  { %359 = vmatmul.mubr.msk.bf16.vlgmr.msra.gmra.mxu0 %vm70_vm1, %v30_v8 }
  0x13   :  { %386 = vmatprep.mubr.msk.bf16.mxu0 %vm411_vm0, %v410_v0  ;;  %371 = vmatpush3.bf16.msra.mxu1 %v402_v10 }
  0x14   :  { %372 = vmatprep.subr.bf16.mxu1 %v410_v0  ;;  %383 = vmatpush3.bf16.msra.mxu0 %v406_v21 }
  0x15   :  { %384 = vmatprep.subr.bf16.mxu0 %v410_v0 }
  0x17   :  { %373 = vmatpush3.bf16.msra.mxu1 %v403_v11 }
  0x18   :  { %374 = vmatprep.subr.bf16.mxu1 %v410_v0  ;;  %385 = vmatpush3.bf16.msra.mxu0 %v407_v30 }
  0x1b   :  { %375 = vmatpush3.bf16.msra.mxu1 %v404_v12 }
  0x1c   :  { %376 = vmatprep.subr.bf16.mxu1 %v410_v0 }
  0x1f   :  { %377 = vmatpush3.bf16.msra.mxu1 %v405_v13 }
  0xd2   :  { %v108_v15 = vpop.f32.mrf.mxu0 }
  0xd3   :  { %v109_v16 = vadd.f32 %v314_v14, %v108_v15 }
  0xd4   :  { %v360_v17 = vpop.f32.mrf.mxu0 }
  0xd5   :  { %v114_v18 = vpack.c.bf16 %v109_v16, %v109_v16 }
  0xd6   :  { %v111_v19 = vpop.f32.mrf.mxu0 }
  0xd7   :  { %379 = vmatmul.mubr.bf16.vlgmr.msra.gmra.mxu1 %v114_v18 }
  0xd8   :  { %v361_v20 = vpop.f32.mrf.mxu0 }
 0x197   :  { %v220_v23 = vpop.f32.mrf.mxu1 }
 0x198   :  { %v221_v24 = vadd.f32 %v320_v22, %v220_v23 }
 0x199   :  { %v380_v25 = vpop.f32.mrf.mxu1 }
 0x19a   :  { %v226_v26 = vmul.f32 0.5, %v221_v24 }
 0x19b   :  { %v223_v27 = vpop.f32.mrf.mxu1 }
 0x19c   :  { %v227_v28 = vmul.f32 1.442695, %v226_v26 }
 0x19d   :  { %v381_v29 = vpop.f32.mrf.mxu1 }
 0x19e   :  { %408 = vpow2.f32 %v227_v28 }
 0x1ab   :  { %v409_v31 = vpop.eup %408 }
 0x1ac   :  { %231 = vrot.lane.b32.xlu0 %v409_v31, %s412_s13 }
 0x1b0   :  { %305 = vrot.lane.b32.xlu0 %v221_v24, %s413_s14 }
 0x21e   :  { %v232_v33 = vpop.permute.xlu0 %231 }
 0x21f   :  { %v234_v34 = vmul.f32 %v232_v33, %v229_v32 }
 0x221   :  { %v235_v35 = vadd.f32 %v234_v34, %v221_v24 }
 0x222   :  { %v306_v40 = vpop.permute.xlu0 %305 }
 0x223   :  { %v236_v36 = vpack.c.bf16 %v235_v35, %v235_v35 }
 0x225   :  { %387 = vmatmul.mubr.msk.bf16.vlgmr.msra.gmra.mxu0 %vm260_vm2, %v236_v36 }
 0x2e5   :  { %v298_v38 = vpop.f32.mrf.mxu0 }
 0x2e6   :  { %v299_v39 = vadd.f32 %v329_v37, %v298_v38 }
 0x2e7   :  { %v388_v41 = vpop.f32.mrf.mxu0 }
 0x2e8   :  { %v308_v42 = vsel %vm70_vm1, %v299_v39, %v306_v40 }
 0x2e9   :  { %309 = vst [vmem:[%s532_s8] sm:$0xff] %v308_v42  ;;  %v301_v43 = vpop.f32.mrf.mxu0 }
 0x2eb   :  { %v389_v44 = vpop.f32.mrf.mxu0 }

</bundles_post_ra>
